<compile_context>
chip_gen: v7x
topology: tpu7x:2x2x1
jax: 0.10.0
libtpu: 0.0.40
codegen_flags: <defaults>
</compile_context>

<pallas_src>
import math

import jax
import jax.numpy as jnp
from jax.experimental import pallas as pl
from jax.experimental.pallas import tpu as pltpu

_EPS = 1e-6
_MASK_VALUE = -1e30


# ----------------------------- small helpers -----------------------------

def _pick_tile(n, candidates):
    for c in candidates:
        if n % c == 0:
            return c
    # TODO(synk): pad awkward sizes instead of falling back to one full-size block.
    return n


def _cparams(dims):
    return pltpu.CompilerParams(dimension_semantics=dims,
                                vmem_limit_bytes=64 * 1024 * 1024)


def _rope_tables(position_ids, d, theta):
    inv_freq = 1.0 / (theta ** (jnp.arange(0, d, 2, dtype=jnp.float32) / d))
    t = position_ids.astype(jnp.float32)                       # (B, S)
    freqs = t[..., None] * inv_freq[None, None, :]             # (B, S, D/2)
    emb = jnp.concatenate([freqs, freqs], axis=-1)             # (B, S, D)
    return jnp.cos(emb), jnp.sin(emb)


def _rotate_half_matrix(d):
    # x @ P == rotate_half(x) == concat(-x[..., d/2:], x[..., :d/2])
    half = d // 2
    eye = jnp.eye(half, dtype=jnp.float32)
    zero = jnp.zeros((half, half), jnp.float32)
    return jnp.concatenate(
        [jnp.concatenate([zero, eye], axis=1),
         jnp.concatenate([-eye, zero], axis=1)], axis=0)


# ----------------------------- Pallas kernels -----------------------------

def _rmsnorm_matmul_kernel(x_ref, g_ref, w_ref, o_ref):
    # x:(TM,K) f32, g:(1,K) f32, w:(K,TN) bf16 -> o:(TM,TN) bf16
    x = x_ref[...].astype(jnp.float32)
    var = jnp.mean(x * x, axis=-1, keepdims=True)
    xn = x * jax.lax.rsqrt(var + _EPS) * g_ref[...].astype(jnp.float32)
    o_ref[...] = jnp.dot(xn.astype(w_ref.dtype), w_ref[...],
                         preferred_element_type=jnp.float32).astype(o_ref.dtype)


def _matmul_residual_kernel(x_ref, w_ref, r_ref, o_ref):
    # out = residual + x @ w  (fused resadd1), w pre-transposed (K,TN)
    y = jnp.dot(x_ref[...].astype(w_ref.dtype), w_ref[...],
                preferred_element_type=jnp.float32)
    o_ref[...] = (y + r_ref[...].astype(jnp.float32)).astype(o_ref.dtype)


def _rmsnorm_router_kernel(x_ref, g_ref, gate_ref, hn_ref, logit_ref):
    # post-attention RMSNorm fused with the router-gate matmul (two outputs).
    x = x_ref[...].astype(jnp.float32)
    var = jnp.mean(x * x, axis=-1, keepdims=True)
    xn = x * jax.lax.rsqrt(var + _EPS) * g_ref[...].astype(jnp.float32)
    hn_ref[...] = xn.astype(hn_ref.dtype)
    # f32 gate matmul (tiny) keeps top-k routing decisions numerically stable.
    logit_ref[...] = jnp.dot(xn, gate_ref[...].astype(jnp.float32),
                             preferred_element_type=jnp.float32).astype(logit_ref.dtype)


def _attention_kernel(q_ref, k_ref, v_ref, cq_ref, sq_ref, ck_ref, sk_ref, p_ref,
                      o_ref, m_sc, l_sc, acc_sc):
    # grid = (B, NKV, S/TQ, S/TKV); online softmax across the last ("arbitrary") kv axis.
    # q block covers a whole GQA group so each K/V tile DMA serves all heads of the group.
    qi = pl.program_id(2)
    ki = pl.program_id(3)
    grp, tq, d = q_ref.shape[1], q_ref.shape[2], q_ref.shape[3]
    tkv = k_ref.shape[2]
    scale = 1.0 / math.sqrt(d)

    @pl.when(ki == 0)
    def _():
        m_sc[...] = jnp.full(m_sc.shape, -jnp.inf, m_sc.dtype)
        l_sc[...] = jnp.zeros(l_sc.shape, l_sc.dtype)
        acc_sc[...] = jnp.zeros(acc_sc.shape, acc_sc.dtype)

    @pl.when(ki * tkv <= qi * tq + (tq - 1))          # skip fully-masked causal KV tiles
    def _():
        rotm = p_ref[...]
        cq = cq_ref[0].astype(jnp.float32)            # (TQ, D)
        sq = sq_ref[0].astype(jnp.float32)
        ck = ck_ref[0].astype(jnp.float32)            # (TKV, D)
        sk = sk_ref[0].astype(jnp.float32)

        # RoPE on the whole query group, flattened to 2-D so every dot is a plain matmul.
        q = q_ref[0].astype(jnp.float32).reshape(grp * tq, d)          # (G*TQ, D)
        cq_g = jnp.concatenate([cq] * grp, axis=0)
        sq_g = jnp.concatenate([sq] * grp, axis=0)
        q = (q * cq_g
             + jnp.dot(q, rotm, preferred_element_type=jnp.float32) * sq_g) * scale

        k = k_ref[0, 0].astype(jnp.float32)                            # (TKV, D)
        k = k * ck + jnp.dot(k, rotm, preferred_element_type=jnp.float32) * sk
        v = v_ref[0, 0].astype(jnp.bfloat16)

        s = jax.lax.dot_general(q.astype(jnp.bfloat16), k.astype(jnp.bfloat16),
                                (((1,), (1,)), ((), ())),
                                preferred_element_type=jnp.float32)    # (G*TQ, TKV)

        # causal mask built in-kernel (no HBM mask tensor)
        r2 = qi * tq + jax.lax.broadcasted_iota(jnp.int32, (tq, tkv), 0)
        c2 = ki * tkv + jax.lax.broadcasted_iota(jnp.int32, (tq, tkv), 1)
        mask = jnp.concatenate([c2 <= r2] * grp, axis=0)               # (G*TQ, TKV)
        s = jnp.where(mask, s, _MASK_VALUE)

        m_new = jnp.maximum(m_sc[...], jnp.max(s, axis=-1, keepdims=True))
        alpha = jnp.exp(m_sc[...] - m_new)
        p = jnp.exp(s - m_new)
        l_sc[...] = alpha * l_sc[...] + jnp.sum(p, axis=-1, keepdims=True)
        acc_sc[...] = alpha * acc_sc[...] + jnp.dot(
            p.astype(jnp.bfloat16), v, preferred_element_type=jnp.float32)
        m_sc[...] = m_new

    @pl.when(ki == pl.num_programs(3) - 1)
    def _():
        o = acc_sc[...] * pl.reciprocal(l_sc[...], approx=True)
        o_ref[0] = o.reshape(grp, tq, d).astype(o_ref.dtype)


def _moe_experts_kernel(x_ref, comb_ref, wg_ref, wu_ref, wd_ref, o_ref, acc_ref):
    # grid = (T/TM, E, I/IC): accumulate combine[:, e] * SwiGLU_e(x) into a VMEM f32 acc.
    e = pl.program_id(1)
    ic = pl.program_id(2)
    last_e = pl.num_programs(1) - 1
    last_ic = pl.num_programs(2) - 1

    @pl.when(jnp.logical_and(e == 0, ic == 0))
    def _():
        acc_ref[...] = jnp.zeros(acc_ref.shape, acc_ref.dtype)

    x = x_ref[...]                                               # (TM, H) bf16
    g = jnp.dot(x, wg_ref[0], preferred_element_type=jnp.float32)   # (TM, IC)
    u = jnp.dot(x, wu_ref[0], preferred_element_type=jnp.float32)
    h = (u * (g * jax.nn.sigmoid(g))).astype(wd_ref.dtype)          # up * silu(gate)
    d = jnp.dot(h, wd_ref[0], preferred_element_type=jnp.float32)   # (TM, H)

    n_e = comb_ref.shape[-1]
    sel = jax.lax.broadcasted_iota(jnp.int32, (1, n_e), 1) == e
    cw = jnp.sum(jnp.where(sel, comb_ref[...].astype(jnp.float32), 0.0),
                 axis=-1, keepdims=True)                         # (TM, 1)
    acc_ref[...] += cw * d

    @pl.when(jnp.logical_and(e == last_e, ic == last_ic))
    def _():
        o_ref[...] = acc_ref[...].astype(o_ref.dtype)


def _shared_finalize_kernel(x_ref, wg_ref, wu_ref, wd_ref, sg_ref,
                            exp_ref, res_ref, o_ref, acc_ref):
    # grid = (T/TM, I/IC): shared-expert SwiGLU accumulated over I chunks, then
    # out = residual + expert_sum + sigmoid(x @ sgate) * shared   (fused resadd2)
    ic = pl.program_id(1)

    @pl.when(ic == 0)
    def _():
        acc_ref[...] = jnp.zeros(acc_ref.shape, acc_ref.dtype)

    x = x_ref[...]                                               # (TM, H) bf16
    g = jnp.dot(x, wg_ref[...], preferred_element_type=jnp.float32)
    u = jnp.dot(x, wu_ref[...], preferred_element_type=jnp.float32)
    h = (u * (g * jax.nn.sigmoid(g))).astype(wd_ref.dtype)
    acc_ref[...] += jnp.dot(h, wd_ref[...], preferred_element_type=jnp.float32)

    @pl.when(ic == pl.num_programs(1) - 1)
    def _():
        gate = jax.nn.sigmoid(jnp.dot(x.astype(jnp.float32),
                                      sg_ref[...].astype(jnp.float32),
                                      preferred_element_type=jnp.float32))  # (TM, 1)
        y = (res_ref[...].astype(jnp.float32) + exp_ref[...].astype(jnp.float32)
             + gate * acc_ref[...])
        o_ref[...] = y.astype(o_ref.dtype)


# ----------------------------- wrappers -----------------------------

def rmsnorm_qkv(x2d, gamma, w_t):
    m, k = x2d.shape
    n = w_t.shape[1]
    tm = _pick_tile(m, (256, 128))
    tn = _pick_tile(n, (2048, 1024, 512, 256))
    return pl.pallas_call(
        _rmsnorm_matmul_kernel,
        out_shape=jax.ShapeDtypeStruct((m, n), jnp.bfloat16),
        grid=(m // tm, n // tn),
        in_specs=[pl.BlockSpec((tm, k), lambda i, j: (i, 0)),
                  pl.BlockSpec((1, k), lambda i, j: (0, 0)),
                  pl.BlockSpec((k, tn), lambda i, j: (0, j))],
        out_specs=pl.BlockSpec((tm, tn), lambda i, j: (i, j)),
        compiler_params=_cparams(("parallel", "parallel")),
    )(x2d, gamma.reshape(1, -1), w_t)


def oproj_residual(attn2d, w_t, residual2d):
    m, k = attn2d.shape
    n = w_t.shape[1]
    tm = _pick_tile(m, (256, 128))
    tn = _pick_tile(n, (2048, 1024, 512, 256))
    return pl.pallas_call(
        _matmul_residual_kernel,
        out_shape=jax.ShapeDtypeStruct((m, n), residual2d.dtype),
        grid=(m // tm, n // tn),
        in_specs=[pl.BlockSpec((tm, k), lambda i, j: (i, 0)),
                  pl.BlockSpec((k, tn), lambda i, j: (0, j)),
                  pl.BlockSpec((tm, tn), lambda i, j: (i, j))],
        out_specs=pl.BlockSpec((tm, tn), lambda i, j: (i, j)),
        compiler_params=_cparams(("parallel", "parallel")),
    )(attn2d, w_t, residual2d)


def rmsnorm_router(x2d, gamma, gate_t):
    m, k = x2d.shape
    e = gate_t.shape[1]
    tm = _pick_tile(m, (256, 128))
    return pl.pallas_call(
        _rmsnorm_router_kernel,
        out_shape=(jax.ShapeDtypeStruct((m, k), jnp.bfloat16),
                   jax.ShapeDtypeStruct((m, e), jnp.float32)),
        grid=(m // tm,),
        in_specs=[pl.BlockSpec((tm, k), lambda i: (i, 0)),
                  pl.BlockSpec((1, k), lambda i: (0, 0)),
                  pl.BlockSpec((k, e), lambda i: (0, 0))],
        out_specs=(pl.BlockSpec((tm, k), lambda i: (i, 0)),
                   pl.BlockSpec((tm, e), lambda i: (i, 0))),
        compiler_params=_cparams(("parallel",)),
    )(x2d, gamma.reshape(1, -1), gate_t)


def attention(q, k, v, cos, sin, rot_p):
    b, nh, s, d = q.shape
    nkv = k.shape[1]
    grp = nh // nkv
    t = _pick_tile(s, (256, 128))
    nt = s // t
    q_spec = pl.BlockSpec((1, grp, t, d), lambda bi, hi, qi, ki: (bi, hi, qi, 0))
    # Clamp skipped (fully-masked) KV tiles to the last useful one so they are not DMAed.
    kv_spec = pl.BlockSpec((1, 1, t, d),
                           lambda bi, hi, qi, ki: (bi, hi, jnp.minimum(ki, qi), 0))
    cq_spec = pl.BlockSpec((1, t, d), lambda bi, hi, qi, ki: (bi, qi, 0))
    ck_spec = pl.BlockSpec((1, t, d),
                           lambda bi, hi, qi, ki: (bi, jnp.minimum(ki, qi), 0))
    p_spec = pl.BlockSpec((d, d), lambda bi, hi, qi, ki: (0, 0))
    return pl.pallas_call(
        _attention_kernel,
        out_shape=jax.ShapeDtypeStruct((b, nh, s, d), jnp.bfloat16),
        grid=(b, nkv, nt, nt),
        in_specs=[q_spec, kv_spec, kv_spec, cq_spec, cq_spec, ck_spec, ck_spec, p_spec],
        out_specs=q_spec,
        scratch_shapes=[pltpu.VMEM((grp * t, 1), jnp.float32),
                        pltpu.VMEM((grp * t, 1), jnp.float32),
                        pltpu.VMEM((grp * t, d), jnp.float32)],
        compiler_params=_cparams(("parallel", "parallel", "parallel", "arbitrary")),
    )(q, k, v, cos, sin, cos, sin, rot_p)


def moe_experts(x2d, combine, wg_t, wu_t, wd_t):
    m, h = x2d.shape
    e, _, inter = wg_t.shape                     # (E, H, I)
    tm = _pick_tile(m, (512, 256, 128))
    ic = _pick_tile(inter, (1024, 512, 256, 128))
    return pl.pallas_call(
        _moe_experts_kernel,
        out_shape=jax.ShapeDtypeStruct((m, h), jnp.bfloat16),
        grid=(m // tm, e, inter // ic),
        in_specs=[pl.BlockSpec((tm, h), lambda i, ei, ci: (i, 0)),
                  pl.BlockSpec((tm, e), lambda i, ei, ci: (i, 0)),
                  pl.BlockSpec((1, h, ic), lambda i, ei, ci: (ei, 0, ci)),
                  pl.BlockSpec((1, h, ic), lambda i, ei, ci: (ei, 0, ci)),
                  pl.BlockSpec((1, ic, h), lambda i, ei, ci: (ei, ci, 0))],
        out_specs=pl.BlockSpec((tm, h), lambda i, ei, ci: (i, 0)),
        scratch_shapes=[pltpu.VMEM((tm, h), jnp.float32)],
        compiler_params=_cparams(("parallel", "arbitrary", "arbitrary")),
    )(x2d, combine, wg_t, wu_t, wd_t)


def shared_finalize(x2d, wg_t, wu_t, wd_t, sgate_t, expert_out, residual2d):
    m, h = x2d.shape
    inter = wg_t.shape[1]
    tm = _pick_tile(m, (512, 256, 128))
    ic = _pick_tile(inter, (1024, 512, 256, 128))
    row_h = pl.BlockSpec((tm, h), lambda i, ci: (i, 0))
    return pl.pallas_call(
        _shared_finalize_kernel,
        out_shape=jax.ShapeDtypeStruct((m, h), residual2d.dtype),
        grid=(m // tm, inter // ic),
        in_specs=[row_h,
                  pl.BlockSpec((h, ic), lambda i, ci: (0, ci)),
                  pl.BlockSpec((h, ic), lambda i, ci: (0, ci)),
                  pl.BlockSpec((ic, h), lambda i, ci: (ci, 0)),
                  pl.BlockSpec((h, 1), lambda i, ci: (0, 0)),
                  row_h, row_h],
        out_specs=row_h,
        scratch_shapes=[pltpu.VMEM((tm, h), jnp.float32)],
        compiler_params=_cparams(("parallel", "arbitrary")),
    )(x2d, wg_t, wu_t, wd_t, sgate_t, expert_out, residual2d)


# ----------------------------- decoder layer forward -----------------------------

def decoder_layer_forward(params, hidden_states, position_ids, return_aux=False):
    cfg = params["config"]
    B, S, H = hidden_states.shape
    NH, NKV, D = cfg["num_heads"], cfg["num_kv_heads"], cfg["head_dim"]
    kv_dim = NKV * D
    T = B * S

    x2d = hidden_states.reshape(T, H).astype(jnp.float32)

    # ---- attention block: fused input RMSNorm + one wide (q|k|v) projection ----
    qkv = rmsnorm_qkv(x2d, params["input_layernorm"], params["qkv_proj_t"])    # bf16
    q = qkv[:, :H].reshape(B, S, NH, D).transpose(0, 2, 1, 3)
    k = qkv[:, H:H + kv_dim].reshape(B, S, NKV, D).transpose(0, 2, 1, 3)
    v = qkv[:, H + kv_dim:].reshape(B, S, NKV, D).transpose(0, 2, 1, 3)

    cos, sin = _rope_tables(position_ids, D, cfg["rope_theta"])                # (B,S,D) f32
    rot_p = _rotate_half_matrix(D)

    # flash attention: RoPE, GQA (group-shared K/V), causal mask all inside the kernel
    attn = attention(q, k, v, cos, sin, rot_p)                                 # bf16 (B,NH,S,D)
    attn2d = attn.transpose(0, 2, 1, 3).reshape(T, H)

    # o_proj with fused residual add (resadd1)
    hidden = oproj_residual(attn2d, params["o_proj_t"], x2d)                   # f32 (T,H)

    # ---- MoE block: post-attention RMSNorm fused with router-gate matmul ----
    hn, router_logits = rmsnorm_router(hidden, params["post_attention_layernorm"],
                                       params["router_gate_t"])                # bf16, f32

    E, top_k = cfg["num_experts"], cfg["top_k"]
    routing = jax.nn.softmax(router_logits, axis=-1)
    topw, topi = jax.lax.top_k(routing, top_k)
    if cfg["norm_topk_prob"]:
        topw = topw / jnp.sum(topw, axis=-1, keepdims=True)
    combine = jnp.einsum("tk,tke->te", topw,
                         jax.nn.one_hot(topi, E, dtype=jnp.float32))           # (T,E)

    # all routed experts in ONE pallas_call (expert + I-chunk grid axes, VMEM accumulator)
    expert_out = moe_experts(hn, combine, params["experts_gate_t"],
                             params["experts_up_t"], params["experts_down_t"])  # bf16

    # shared expert + sigmoid gate + expert sum + residual (resadd2), all fused
    out2d = shared_finalize(hn, params["shared_gate_t"], params["shared_up_t"],
                            params["shared_down_t"], params["shared_expert_gate_t"],
                            expert_out, hidden)                                 # f32
    out = out2d.reshape(B, S, H)
    if return_aux:
        return out, router_logits, combine
    return out


# ----------------------------- pure-JAX reference (f32) -----------------------------

def reference_forward(params, hidden_states, position_ids, combine):
    cfg = params["config"]
    B, S, H = hidden_states.shape
    NH, NKV, D = cfg["num_heads"], cfg["num_kv_heads"], cfg["head_dim"]
    G = NH // NKV
    kv_dim = NKV * D
    f32 = jnp.float32

    def rms(x, gm):
        return x * jax.lax.rsqrt(jnp.mean(x * x, -1, keepdims=True) + _EPS) * gm

    x = hidden_states.astype(f32).reshape(-1, H)
    xn = rms(x, params["input_layernorm"])
    qkv = xn @ params["qkv_proj_t"].astype(f32)
    q = qkv[:, :H].reshape(B, S, NH, D).transpose(0, 2, 1, 3)
    k = qkv[:, H:H + kv_dim].reshape(B, S, NKV, D).transpose(0, 2, 1, 3)
    v = qkv[:, H + kv_dim:].reshape(B, S, NKV, D).transpose(0, 2, 1, 3)

    cos, sin = _rope_tables(position_ids, D, cfg["rope_theta"])

    def rope(t):
        rot = jnp.concatenate([-t[..., D // 2:], t[..., :D // 2]], axis=-1)
        return t * cos[:, None] + rot * sin[:, None]

    q, k = rope(q), rope(k)
    k = jnp.repeat(k, G, axis=1)
    v = jnp.repeat(v, G, axis=1)
    s = jnp.einsum("bhqd,bhkd->bhqk", q, k) / math.sqrt(D)
    causal = jnp.tril(jnp.ones((S, S), bool))
    s = jnp.where(causal[None, None], s, _MASK_VALUE)
    p = jax.nn.softmax(s, axis=-1)
    attn = jnp.einsum("bhqk,bhkd->bhqd", p, v)
    attn2d = attn.transpose(0, 2, 1, 3).reshape(-1, H)
    hidden = x + attn2d @ params["o_proj_t"].astype(f32)

    hn = rms(hidden, params["post_attention_layernorm"])
    logits = hn @ params["router_gate_t"].astype(f32)

    def swiglu(xx, wg, wu, wd):
        g = xx @ wg.astype(f32)
        u = xx @ wu.astype(f32)
        return (u * (g * jax.nn.sigmoid(g))) @ wd.astype(f32)

    expert_out = jnp.zeros_like(hidden)
    for e in range(cfg["num_experts"]):
        d = swiglu(hn, params["experts_gate_t"][e], params["experts_up_t"][e],
                   params["experts_down_t"][e])
        expert_out = expert_out + combine[:, e:e + 1] * d
    shared = swiglu(hn, params["shared_gate_t"], params["shared_up_t"],
                    params["shared_down_t"])
    gate = jax.nn.sigmoid(hn @ params["shared_expert_gate_t"].astype(f32))
    out = hidden + expert_out + gate * shared
    return out.reshape(B, S, H), logits


# ----------------------------- parameter init -----------------------------

def init_params(key, *, hidden, num_heads, num_kv_heads, num_experts, moe_inter,
                shared_inter, rope_theta, top_k, norm_topk_prob,
                weight_dtype=jnp.bfloat16):
    head_dim = hidden // num_heads
    keys = jax.random.split(key, 12)

    def w(k, out_f, in_f, scale=0.05):
        # PyTorch Linear weight is [out, in]; store transposed [in, out] so all kernels
        # run plain (M,K)@(K,N) on the MXU with no in-kernel weight transposes.
        m = scale * jax.random.normal(k, (out_f, in_f), jnp.float32)
        return m.T.astype(weight_dtype)

    wq = w(keys[0], hidden, hidden)
    wk = w(keys[1], num_kv_heads * head_dim, hidden)
    wv = w(keys[2], num_kv_heads * head_dim, hidden)

    ek = jax.random.split(keys[5], num_experts * 3)
    eg = jnp.stack([w(ek[3 * e + 0], moe_inter, hidden) for e in range(num_experts)])
    eu = jnp.stack([w(ek[3 * e + 1], moe_inter, hidden) for e in range(num_experts)])
    ed = jnp.stack([w(ek[3 * e + 2], hidden, moe_inter) for e in range(num_experts)])

    return {
        "config": dict(num_heads=num_heads, num_kv_heads=num_kv_heads, head_dim=head_dim,
                       rope_theta=rope_theta, num_experts=num_experts, top_k=top_k,
                       norm_topk_prob=norm_topk_prob),
        "input_layernorm": 1.0 + 0.1 * jax.random.normal(keys[10], (hidden,), jnp.float32),
        "post_attention_layernorm": 1.0 + 0.1 * jax.random.normal(keys[11], (hidden,),
                                                                  jnp.float32),
        "qkv_proj_t": jnp.concatenate([wq, wk, wv], axis=1),     # (H, H+2*kv_dim)
        "o_proj_t": w(keys[3], hidden, hidden),
        "router_gate_t": w(keys[4], num_experts, hidden),        # (H, E)
        "experts_gate_t": eg, "experts_up_t": eu, "experts_down_t": ed,
        "shared_gate_t": w(keys[6], shared_inter, hidden),       # (H, Is)
        "shared_up_t": w(keys[7], shared_inter, hidden),
        "shared_down_t": w(keys[8], hidden, shared_inter),       # (Is, H)
        "shared_expert_gate_t": w(keys[9], 1, hidden),           # (H, 1)
    }


# ----------------------------- main -----------------------------

if __name__ == "__main__":
    B, S, H = 2, 512, 128
    NUM_HEADS, NUM_KV_HEADS = 4, 2
    NUM_EXPERTS, TOP_K = 4, 2
    MOE_INTER, SHARED_INTER = 384, 384

    root = jax.random.PRNGKey(0)
    k_param, k_x = jax.random.split(root)

    params = init_params(k_param, hidden=H, num_heads=NUM_HEADS,
                         num_kv_heads=NUM_KV_HEADS, num_experts=NUM_EXPERTS,
                         moe_inter=MOE_INTER, shared_inter=SHARED_INTER,
                         rope_theta=10000.0, top_k=TOP_K, norm_topk_prob=False)

    hidden_states = jax.random.normal(k_x, (B, S, H), dtype=jnp.float32)
    position_ids = jnp.broadcast_to(jnp.arange(S, dtype=jnp.int32), (B, S))

    out, logits_k, combine = decoder_layer_forward(params, hidden_states, position_ids,
                                                   return_aux=True)
    out = jax.block_until_ready(out)
    assert out.shape == (B, S, H) and bool(jnp.all(jnp.isfinite(out)))

    # self-check vs pure-JAX f32 reference (kernels use bf16 intermediates -> loose tol)
    out_ref, logits_ref = reference_forward(params, hidden_states, position_ids, combine)
    max_err = float(jnp.max(jnp.abs(out - out_ref)))
    logit_err = float(jnp.max(jnp.abs(logits_k - logits_ref)))
    assert max_err < 7.5e-2, f"output mismatch: {max_err}"
    assert logit_err < 5e-2, f"router-logit mismatch: {logit_err}"

    print("KERNEL_OK")
</pallas_src>

<mosaic_0001>
module attributes {stable_mosaic.version = 11 : i64} {
  func.func @_rmsnorm_matmul_kernel(%arg0: i32, %arg1: i32, %arg2: memref<256x128xf32, #tpu.memory_space<vmem>>, %arg3: memref<1x128xf32, #tpu.memory_space<vmem>>, %arg4: memref<128x256xbf16, #tpu.memory_space<vmem>>, %arg5: memref<256x256xbf16, #tpu.memory_space<vmem>>) attributes {dimension_semantics = [#tpu.dimension_semantics<parallel>, #tpu.dimension_semantics<parallel>], iteration_bounds = array<i64: 4, 1>, scalar_prefetch = 0 : i64, scratch_operands = 0 : i64, tpu.core_type = #tpu.core_type<tc>, window_params = [{transform_indices = @transform_0, window_bounds = array<i64: 256, 128>}, {pipeline_mode = #tpu.pipeline_mode<synchronous>, transform_indices = @transform_1, window_bounds = array<i64: 1, 128>}, {transform_indices = @transform_2, window_bounds = array<i64: 128, 256>}, {transform_indices = @transform_3, window_bounds = array<i64: 256, 256>}]} {
    %c0 = arith.constant 0 : index
    %c0_0 = arith.constant 0 : index
    %0 = vector.load %arg2[%c0, %c0_0] : memref<256x128xf32, #tpu.memory_space<vmem>>, vector<256x128xf32>
    %1 = arith.mulf %0, %0 : vector<256x128xf32>
    %cst = arith.constant dense<0.000000e+00> : vector<256xf32>
    %2 = vector.multi_reduction <add>, %1, %cst [1] : vector<256x128xf32> to vector<256xf32>
    %3 = vector.shape_cast %2 : vector<256xf32> to vector<256x1xf32>
    %cst_1 = arith.constant 1.280000e+02 : f32
    %4 = vector.broadcast %cst_1 : f32 to vector<256x1xf32>
    %5 = arith.divf %3, %4 : vector<256x1xf32>
    %cst_2 = arith.constant 9.99999997E-7 : f32
    %6 = vector.broadcast %cst_2 : f32 to vector<256x1xf32>
    %7 = arith.addf %5, %6 : vector<256x1xf32>
    %8 = math.rsqrt %7 : vector<256x1xf32>
    %9 = vector.broadcast %8 : vector<256x1xf32> to vector<256x128xf32>
    %10 = arith.mulf %0, %9 : vector<256x128xf32>
    %c0_3 = arith.constant 0 : index
    %c0_4 = arith.constant 0 : index
    %11 = vector.load %arg3[%c0_3, %c0_4] : memref<1x128xf32, #tpu.memory_space<vmem>>, vector<1x128xf32>
    %12 = vector.broadcast %11 : vector<1x128xf32> to vector<256x128xf32>
    %13 = arith.mulf %10, %12 : vector<256x128xf32>
    %14 = arith.truncf %13 : vector<256x128xf32> to vector<256x128xbf16>
    %c0_5 = arith.constant 0 : index
    %c0_6 = arith.constant 0 : index
    %15 = vector.load %arg4[%c0_5, %c0_6] : memref<128x256xbf16, #tpu.memory_space<vmem>>, vector<128x256xbf16>
    %cst_7 = arith.constant dense<0.000000e+00> : vector<256x256xf32>
    %16 = tpu.matmul %14, %15, %cst_7 {dimension_numbers = #tpu.dot_dimension_numbers<[1], [0], [0], [1], [0, 0, 1, 1], [], []>} : vector<256x128xbf16>, vector<128x256xbf16>, vector<256x256xf32> -> vector<256x256xf32>
    %17 = arith.truncf %16 : vector<256x256xf32> to vector<256x256xbf16>
    %c0_8 = arith.constant 0 : index
    %c0_9 = arith.constant 0 : index
    %18 = vector.load %arg5[%c0_8, %c0_9] : memref<256x256xbf16, #tpu.memory_space<vmem>>, vector<256x256xbf16>
    tpu.vector_store %arg5[%c0_8, %c0_9], %17 {strides = array<i32>} : memref<256x256xbf16, #tpu.memory_space<vmem>>, vector<256x256xbf16>,
    return
  }
  func.func @transform_0(%arg0: i32, %arg1: i32) -> (i32, i32) {
    %c0_i32 = arith.constant 0 : i32
    %c0_i32_0 = arith.constant 0 : i32
    return %arg0, %c0_i32 : i32, i32
  }
  func.func @transform_1(%arg0: i32, %arg1: i32) -> (i32, i32) {
    %c0_i32 = arith.constant 0 : i32
    %c0_i32_0 = arith.constant 0 : i32
    %c0_i32_1 = arith.constant 0 : i32
    return %c0_i32, %c0_i32_0 : i32, i32
  }
  func.func @transform_2(%arg0: i32, %arg1: i32) -> (i32, i32) {
    %c0_i32 = arith.constant 0 : i32
    %c0_i32_0 = arith.constant 0 : i32
    return %c0_i32, %arg1 : i32, i32
  }
  func.func @transform_3(%arg0: i32, %arg1: i32) -> (i32, i32) {
    %c0_i32 = arith.constant 0 : i32
    return %arg0, %arg1 : i32, i32
  }
}

</mosaic_0001>

<bundles_post_ra>
// kernel: tpu_custom_call.1
= control target key start
LH: loop header
LB: loop body
LE: loop exit
PB: predicated region body
PF: predicated region fallthrough
CT: control target
= control target key end

     0   :  { %8 = vsyncpa [#allocation3], 0  ;;  %s2230_s0 = inlined_call_operand.hbm [shape: f32[1024,128], index: 0, kind: input, shape index: {}]   ;;  %s2231_s1 = inlined_call_operand.hbm [shape: f32[1,128], index: 1, kind: input, shape index: {}]   ;;  %s2232_s2 = inlined_call_operand.hbm [shape: bf16[128,256], index: 2, kind: input, shape index: {}]   ;;  %s2233_s3 = inlined_call_operand.hbm [shape: bf16[1024,256], index: 3, kind: output, shape index: {}]  }
   0x1   :  { %10 = vsyncpa [#allocation3 + $0x1], 0 }
   0x2   :  { %11 = vsyncpa [#allocation6], 0 }
   0x3   :  { %12 = vsyncpa [#allocation4], 0 }
   0x4   :  { %14 = vsyncpa [#allocation4 + $0x1], 0  ;;  %s1689_s12 = smov 0   ;;  %s1691_s13 = smov 0  }
   0x5   :  { %s1693_s14 = smov 0   ;;  %s1695_s15 = smov 0  }
   0x6   :  { %s1697_s16 = smov 0   ;;  %s1699_s17 = smov 0  }
   0x7 LB: > { %s1190_s18 = sadd.s32 4294967295, %s1658_s17   ;;  %s1191_s19 = sadd.s32 4294967294, %s1658_s17   ;;  %s1658_s17 = sphi %s1699_s17, %s20_s17   ;;  %s1654_s16 = sphi %s1697_s16, %s2260_s16   ;;  %s1650_s15 = sphi %s1695_s15, %s2259_s15   ;;  %s1646_s14 = sphi %s1693_s14, %s2258_s14   ;;  %s1642_s13 = sphi %s1691_s13, %s2257_s13   ;;  %s1638_s12 = sphi %s1689_s12, %s2256_s12  }
   0x8   : > { %p46_p0 = scmp.ne.s32.totalorder %s1646_s14, %s1642_s13  ;;  %p47_p1 = scmp.eq.s32.totalorder %s1658_s17, 0 }
   0x9   : > { %p52_p2 = scmp.ne.s32.totalorder %s1642_s13, %s1638_s12  ;;  %p1726_p3 = scmp.eq.s32.totalorder %s1190_s18, 0 }
   0xa   : > { %p125_p4 = scmp.eq.s32.totalorder %s1190_s18, 3  ;;  %p1730_p5 = por %p47_p1, %p46_p0 }
   0xb   : > { %s2240_s20 = scalar_select %p1726_p3, 1, 0 }
   0xc   : > { %p131_p6 = scmp.eq.s32.totalorder %s1191_s19, 3  ;;  %p1736_p7 = por %p1726_p3, %p52_p2 }
   0xd   : > { %p1740_p8 = por %p125_p4, %p46_p0  ;;  %p1192_p10 = scmp.ge.s32.totalorder %s1658_s17, 1 }
   0xe   : > { %s2242_s22 = scalar_select %p1736_p7, 1, 0 }
   0xf   : > { %s2243_s23 = scalar_select %p1740_p8, 1, 0 }
  0x10   : > { %p1744_p9 = por %p131_p6, %p52_p2  ;;  %p138_p11 = scmp.lt.s32.totalorder %s1658_s17, 5 }
  0x11   : > { %s1660_s26 = smov [#allocation5]   ;;  %p1339_p13 = scmp.lt.s32.totalorder %s1658_s17, 4 }
  0x12   : > { %s2244_s24 = scalar_select %p1744_p9, 1, 0 }
  0x13   : > { %p1750_p12 = pnand %p1192_p10, %p138_p11  ;;  %s151_s27 = sshll.u32 %s1660_s26, 4  ;;  %s152_s27 = int_to_ptr.vmem [resolvable:$true] %s151_s27 }
  0x14   : > { %p1759_p1 = pnand %p1339_p13, %p1730_p5  ;;  %s1661_s29 = smov [#allocation7]  }
  0x15   : > { %s2245_s25 = scalar_select %p1750_p12, 1, 0 }
  0x16   : > { %p1322_p0 = pneg %p1750_p12  ;;  %s164_s30 = sshll.u32 %s1661_s29, 4  ;;  %s1769_s30 = int_to_ptr.vmem [resolvable:$true] %s164_s30 }
  0x17   : > { %s2246_s28 = scalar_select %p1759_p1, 1, 0 }
  0x18   : > { %p1765_p2 = pnand %p1322_p0, %p1726_p3  ;;  %s1486_s7 = scalar_lea.hbm %s2231_s1, 16 }
  0x19   : > { %p1487_p4 = scmp.ne.s32.totalorder %s2231_s1, %s1486_s7  ;;  %p1493_p11 = scmp.lt.u32.totalorder %s1486_s7, %s2231_s1 }
  0x1a   : > { %p1488_p5 = pneg %p1765_p2 }
  0x1c   : > { %p1489_p6 = pnand %p1488_p5, %p1487_p4 }
  0x1e   : > { %p1490_p10 = pneg %p1489_p6 }
  0x20   : > { %p1495_p13 = pnand %p1493_p11, %p1490_p10 }
  0x22   : > { %1498 = shalt.err (!%p1495_p13)
}
  0x23   : > { %s1499_s18 = scalar_lea.vmem %s152_s27, 16  ;;  %s1506_s19 = scalar_lea.vmem %s152_s27, 32 }
  0x24   : > { %p1500_p0 = scmp.ne.s32.totalorder %s152_s27, %s1499_s18  ;;  %p1507_p3 = scmp.lt.s32.totalorder %s152_s27, %s152_s27 }
  0x25   : > { %p1508_p7 = scmp.lt.s32.totalorder %s1506_s19, %s1499_s18 }
  0x26   : > { %p1502_p9 = pnand %p1500_p0, %p1488_p5 }
  0x27   : > { %p1509_p12 = por %p1508_p7, %p1507_p3 }
  0x28   : > { %p1503_p8 = pneg %p1502_p9 }
  0x2a   : > { %p1510_p1 = pnand %p1509_p12, %p1503_p8 }
  0x2c   : > { %1513 = shalt.err (!%p1510_p1)
}
  0x2d   : > { %1325 = dma.hbm_to_vmem [thread:$0]  (!%p1765_p2), %s2231_s1, 16, %s152_s27, [#allocation6]  }
  0x2e   : > { %s1514_s6 = scalar_lea.hbm %s2232_s2, 2048 }
  0x2f   : > { %p1515_p9 = scmp.ne.s32.totalorder %s2232_s2, %s1514_s6  ;;  %p1521_p8 = scmp.lt.u32.totalorder %s1514_s6, %s2232_s2 }
  0x31   : > { %p1517_p3 = pnand %p1515_p9, %p1488_p5 }
  0x33   : > { %p1518_p7 = pneg %p1517_p3 }
  0x35   : > { %p1523_p12 = pnand %p1521_p8, %p1518_p7 }
  0x37   : > { %1526 = shalt.err (!%p1523_p12)
}
  0x38   : > { %s1527_s27 = scalar_lea.vmem %s1769_s30, 2048  ;;  %p1535_p10 = scmp.lt.s32.totalorder %s1769_s30, %s1769_s30 }
  0x39   : > { %p1528_p1 = scmp.ne.s32.totalorder %s1769_s30, %s1527_s27  ;;  %p1536_p11 = scmp.lt.s32.totalorder %s1527_s27, %s1527_s27 }
  0x3b   : > { %p1530_p4 = pnand %p1528_p1, %p1488_p5  ;;  %p1537_p13 = por %p1536_p11, %p1535_p10 }
  0x3d   : > { %p1531_p6 = pneg %p1530_p4 }
  0x3f   : > { %p1538_p0 = pnand %p1537_p13, %p1531_p6 }
  0x41   : > { %1541 = shalt.err (!%p1538_p0)
}
  0x42   : > { %s1662_s11 = smov 128   ;;  %s1663_s18 = smov 8  }
  0x43   : > { %1328 = dma.hbm_to_vmem [thread:$0]  (!%p1765_p2), %s2232_s2, 2048, %s1769_s30, [#allocation6], %s1662_s11, %s1662_s11, %s1663_s18  }
  0x44   : > { %s178_s26 = sand.u32 1, %s1646_s14   ;;  %s32_s29 = sadd.s32 1, %s1654_s16 }
  0x45   : > { %s1196_s5 = sshll.u32 %s178_s26, 8  ;;  %p34_p5 = scmp.ge.s32.totalorder %s32_s29, 4 }
  0x46   : > { %s1259_s6 = sshll.u32 %s1654_s16, 12  ;;  %s182_s7 = scalar_lea.vmem [#allocation2], %s1196_s5 }
  0x47   : > { %s189_s8 = sshll.u32 %s182_s7, 4  ;;  %s2262_s29 = smov (%p34_p5, %s32_s29), 0  ;;  %s1831_s8 = int_to_ptr.vmem [resolvable:$true] %s189_s8 }
  0x48   : > { %s1829_s10 = scalar_lea.hbm %s2230_s0, %s1259_s6  ;;  %s36_s27 = ssub.s32 %s1654_s16, %s2262_s29 }
  0x49   : > { %p1836_p2 = scmp.eq.s32.totalorder %s36_s27, 0  ;;  %s1840_s21 = scalar_lea.sflag [#allocation3], %s178_s26 }
  0x4a   : > { %s1542_s5 = scalar_lea.hbm %s1829_s10, 4096  ;;  %p2249_p3 = scmp.ne.s32.totalorder %s2246_s28, 0 }
  0x4b   : > { %p1543_p9 = scmp.ne.s32.totalorder %s1829_s10, %s1542_s5  ;;  %s1547_s9 = scalar_lea.hbm %s2230_s0, 16384 }
  0x4c   : > { %p1544_p7 = pneg %p2249_p3  ;;  %p1548_p1 = scmp.lt.u32.totalorder %s1829_s10, %s2230_s0 }
  0x4d   : > { %p1549_p4 = scmp.lt.u32.totalorder %s1547_s9, %s1542_s5  ;;  %p1551_p10 = scmp.lt.u32.totalorder %s1542_s5, %s1829_s10 }
  0x4e   : > { %p1545_p8 = pnand %p1544_p7, %p1543_p9 }
  0x4f   : > { %p1550_p6 = por %p1549_p4, %p1548_p1 }
  0x50   : > { %p1546_p12 = pneg %p1545_p8 }
  0x51   : > { %p1552_p11 = por %p1551_p10, %p1550_p6 }
  0x53   : > { %p1553_p13 = pnand %p1552_p11, %p1546_p12 }
  0x55   : > { %1556 = shalt.err (!%p1553_p13)
}
  0x56   : > { %s1557_s26 = scalar_lea.vmem %s1831_s8, 4096  ;;  %s1664_s27 = smov [#allocation2]  }
  0x57   : > { %p1558_p0 = scmp.ne.s32.totalorder %s1831_s8, %s1557_s26  ;;  %s1562_s6 = sshll.u32 %s1664_s27, 4  ;;  %s1563_s6 = int_to_ptr.vmem [resolvable:$false] %s1562_s6 }
  0x58   : > { %s1564_s30 = scalar_lea.vmem %s1563_s6, 8192  ;;  %p1565_p8 = scmp.lt.s32.totalorder %s1831_s8, %s1563_s6 }
  0x59   : > { %p1560_p5 = pnand %p1558_p0, %p1544_p7  ;;  %p1566_p1 = scmp.lt.s32.totalorder %s1564_s30, %s1557_s26 }
  0x5b   : > { %p1561_p9 = pneg %p1560_p5  ;;  %p1567_p4 = por %p1566_p1, %p1565_p8 }
  0x5d   : > { %p1568_p6 = pnand %p1567_p4, %p1561_p9 }
  0x5f   : > { %1571 = shalt.err (!%p1568_p6)
}
  0x60   : > { %1332 = dma.hbm_to_vmem [thread:$0]  (!%p2249_p3), %s1829_s10, 4096, %s1831_s8, %s1840_s21, %s1662_s11, %s1662_s11, %s1663_s18  }
  0x61   : > { %s2250_s5 = sadd.s32 1, %s1646_s14  ;;  %p2251_p7 = scmp.ne.s32.totalorder %s2245_s25, 0 }
  0x62   : > { %s1876_s7 = scalar_select %p1836_p2, %s1646_s14, %s2250_s5  }
  0x63   : > { %201 = sbr.rel (%p2251_p7) target bundleno = 569 (0x239), region = 32  ;;  %s1881_s28 = sand.u32 (!%p2251_p7), 1, %s1642_s13  }
  0x64   : > { %s1200_s9 = sshll.u32 (!%p2251_p7), %s1881_s28, 8  ;;  %s204_s4 = scalar_lea.sflag (!%p2251_p7), [#allocation3], %s1881_s28 }
  0x65   : > { %s1887_s26 = scalar_lea.vmem (!%p2251_p7), [#allocation2], %s1200_s9  ;;  %p2252_p3 = scmp.ne.s32.totalorder (!%p2251_p7), %s2242_s22, 0 }
  0x6a   : > { %1625 = dma.done.wait (%p2252_p3), %s204_s4, 4096  }
  0x6b   : > { %1627 = vsyncadd (%p2252_p3), %s204_s4, 4294963200  ;;  %p2253_p2 = scmp.ne.s32.totalorder %s2240_s20, 0 }
  0x6d   : > { %1629 = dma.done.wait (%p2253_p2), [#allocation6], 2064  }
  0x6e   : > { %1631 = vsyncadd (%p2253_p2), [#allocation6], 4294965232  ;;  %v1898_v0 = vld [vmem:[%s1887_s26 + $0x80] sm:$0xff]  ;;  %v1904_v2 = vld [vmem:[%s1887_s26 + $0x88] sm:$0xff]  ;;  %s2141_s20 = scalar_lea.vmem [#allocation8], %s1200_s9  ;;  %s1293_s22 = sshll.u32 %s1650_s15, 12 }
  0x6f   : > { %v1901_v1 = vld [vmem:[%s1887_s26] sm:$0xff]  ;;  %v291_v3 = vmul.f32 %v1898_v0, %v1898_v0  ;;  %v1911_v5 = vld [vmem:[%s1887_s26 + $0x8] sm:$0xff]  ;;  %v292_v6 = vmul.f32 %v1904_v2, %v1904_v2  ;;  %v1918_v8 = vld [vmem:[%s1887_s26 + $0x18] sm:$0xff]  ;;  %s1085_s25 = sshll.u32 %s2141_s20, 4  ;;  %s2176_s8 = scalar_lea.hbm %s2233_s3, %s1293_s22  ;;  %s2178_s25 = int_to_ptr.vmem [resolvable:$true] %s1085_s25 }
  0x70   : > { %v275_v4 = vmul.f32 %v1901_v1, %v1901_v1  ;;  %v276_v7 = vmul.f32 %v1911_v5, %v1911_v5  ;;  %v1921_v9 = vld [vmem:[%s1887_s26 + $0x10] sm:$0xff]  ;;  %v278_v10 = vmul.f32 %v1918_v8, %v1918_v8  ;;  %v1928_v12 = vld [vmem:[%s1887_s26 + $0x98] sm:$0xff]  ;;  %v1934_v14 = vld [vmem:[%s1887_s26 + $0x28] sm:$0xff]  ;;  %s1069_s15 = scalar_lea.sflag [#allocation4], %s1881_s28  ;;  %s1572_s10 = scalar_lea.vmem %s2178_s25, 4096 }
  0x71   : > { %339 = vadd.xlane.f32.xlu1 %v291_v3  ;;  %v277_v11 = vmul.f32 %v1921_v9, %v1921_v9  ;;  %v1931_v13 = vld [vmem:[%s1887_s26 + $0x90] sm:$0xff]  ;;  %v1937_v15 = vld [vmem:[%s1887_s26 + $0x20] sm:$0xff]  ;;  %v294_v16 = vmul.f32 %v1928_v12, %v1928_v12  ;;  %v1944_v22 = vld [vmem:[%s1887_s26 + $0xa8] sm:$0xff]  ;;  %v280_v24 = vmul.f32 %v1934_v14, %v1934_v14  ;;  %p1573_p12 = scmp.ne.s32.totalorder %s2178_s25, %s1572_s10  ;;  %p2254_p10 = scmp.ne.s32.totalorder %s2243_s23, 0 }
  0x72   : > { %307 = vadd.xlane.f32.xlu0 %v275_v4  ;;  %v293_v17 = vmul.f32 %v1931_v13, %v1931_v13  ;;  %v1398_v18 = vld [vmem:[#allocation7 + $0x4] ss:$8 sps:$4 sm:$0xff]   ;;  %v1400_v19 = vld [vmem:[#allocation7] ss:$8 sps:$4 sm:$0xff]   ;;  %v1401_v20 = vld [vmem:[#allocation7 + $0x14] ss:$8 sps:$4 sm:$0xff]   ;;  %v279_v25 = vmul.f32 %v1937_v15, %v1937_v15  ;;  %v296_v28 = vmul.f32 %v1944_v22, %v1944_v22 }
  0x73   : > { %651 = vmatprep.subr.bf16.mxu0 %v1398_v18  ;;  %1294 = vmatprep.subr.bf16.mxu1 %v1398_v18  ;;  %v1403_v21 = vld [vmem:[#allocation7 + $0x10] ss:$8 sps:$4 sm:$0xff]   ;;  %v1947_v23 = vld [vmem:[%s1887_s26 + $0xa0] sm:$0xff]  ;;  %v1978_v42 = vld [vmem:[%s1887_s26 + $0x48] sm:$0xff]  ;;  %p1574_p11 = pnand %p1573_p12, %p2254_p10  ;;  %s1666_s19 = smov [#allocation8]  }
  0x74   : > { %652 = vmatpush1.bf16.msra.mxu0 %v1400_v19  ;;  %1302 = vmatpush1.bf16.msra.mxu1 %v1400_v19  ;;  %v1404_v26 = vld [vmem:[#allocation7 + $0x24] ss:$8 sps:$4 sm:$0xff]   ;;  %v1406_v27 = vld [vmem:[#allocation7 + $0x20] ss:$8 sps:$4 sm:$0xff]   ;;  %v295_v29 = vmul.f32 %v1947_v23, %v1947_v23  ;;  %v1958_v30 = vld [vmem:[%s1887_s26 + $0x38] sm:$0xff]  ;;  %v284_v46 = vmul.f32 %v1978_v42, %v1978_v42  ;;  %s1576_s21 = sshll.u32 %s1666_s19, 4  ;;  %s1577_s21 = int_to_ptr.vmem [resolvable:$false] %s1576_s21 }
  0x75   : > { %341 = vadd.xlane.f32.xlu1 %v292_v6  ;;  %653 = vmatprep.subr.bf16.mxu0 %v1401_v20  ;;  %v1961_v31 = vld [vmem:[%s1887_s26 + $0x30] sm:$0xff]  ;;  %v282_v34 = vmul.f32 %v1958_v30, %v1958_v30  ;;  %v1968_v36 = vld [vmem:[%s1887_s26 + $0xb8] sm:$0xff]  ;;  %v1412_v39 = vld [vmem:[#allocation7 + $0x40] ss:$8 sps:$4 sm:$0xff]   ;;  %v1665_v6 = vmov 0   ;;  %p1575_p13 = pneg %p1574_p11  ;;  %s1578_s27 = scalar_lea.vmem %s1577_s21, 8192 }
  0x76   : > { %309 = vadd.xlane.f32.xlu0 %v276_v7  ;;  %1295 = vmatprep.subr.bf16.mxu1 %v1401_v20  ;;  %v1407_v32 = vld [vmem:[#allocation7 + $0x34] ss:$8 sps:$4 sm:$0xff]   ;;  %v1409_v33 = vld [vmem:[#allocation7 + $0x30] ss:$8 sps:$4 sm:$0xff]   ;;  %v281_v35 = vmul.f32 %v1961_v31, %v1961_v31  ;;  %v1410_v38 = vld [vmem:[#allocation7 + $0x44] ss:$8 sps:$4 sm:$0xff]   ;;  %v298_v40 = vmul.f32 %v1968_v36, %v1968_v36  ;;  %p1579_p0 = scmp.lt.s32.totalorder %s2178_s25, %s1577_s21  ;;  %p1580_p5 = scmp.lt.s32.totalorder %s1578_s27, %s1572_s10 }
  0x77   : > { %v1971_v37 = vld [vmem:[%s1887_s26 + $0xb0] sm:$0xff]  ;;  %v1981_v43 = vld [vmem:[%s1887_s26 + $0x40] sm:$0xff]  ;;  %v1988_v48 = vld [vmem:[%s1887_s26 + $0xc8] sm:$0xff]  ;;  %683 = vmatprep.mubr.bf16.mxu0 %v1665_v6  ;;  %763 = vmatprep.mubr.bf16.mxu1 %v1665_v6 }
  0x78   : > { %654 = vmatpush1.bf16.msra.mxu0 %v1403_v21  ;;  %1303 = vmatpush1.bf16.msra.mxu1 %v1403_v21  ;;  %v297_v41 = vmul.f32 %v1971_v37, %v1971_v37  ;;  %v1413_v44 = vld [vmem:[#allocation7 + $0x54] ss:$8 sps:$4 sm:$0xff]   ;;  %v1415_v45 = vld [vmem:[#allocation7 + $0x50] ss:$8 sps:$4 sm:$0xff]   ;;  %v283_v47 = vmul.f32 %v1981_v43, %v1981_v43  ;;  %v1416_v50 = vld [vmem:[#allocation7 + $0x64] ss:$8 sps:$4 sm:$0xff]   ;;  %v300_v52 = vmul.f32 %v1988_v48, %v1988_v48  ;;  %p1581_p9 = por %p1580_p5, %p1579_p0 }
  0x79   : > { %313 = vadd.xlane.f32.xlu1 %v278_v10  ;;  %655 = vmatprep.subr.bf16.mxu0 %v1404_v26  ;;  %v1991_v49 = vld [vmem:[%s1887_s26 + $0xc0] sm:$0xff]  ;;  %v1998_v54 = vld [vmem:[%s1887_s26 + $0x58] sm:$0xff]  ;;  %v2001_v55 = vld [vmem:[%s1887_s26 + $0x50] sm:$0xff] }
  0x7a   : > { %311 = vadd.xlane.f32.xlu0 %v277_v11  ;;  %1296 = vmatprep.subr.bf16.mxu1 %v1404_v26  ;;  %v1418_v51 = vld [vmem:[#allocation7 + $0x60] ss:$8 sps:$4 sm:$0xff]   ;;  %v299_v53 = vmul.f32 %v1991_v49, %v1991_v49  ;;  %v1419_v56 = vld [vmem:[#allocation7 + $0x74] ss:$8 sps:$4 sm:$0xff]   ;;  %v1421_v57 = vld [vmem:[#allocation7 + $0x70] ss:$8 sps:$4 sm:$0xff]   ;;  %v286_v58 = vmul.f32 %v1998_v54, %v1998_v54  ;;  %v285_v59 = vmul.f32 %v2001_v55, %v2001_v55  ;;  %p1582_p8 = pnand %p1581_p9, %p1575_p13 }
  0x7b   : > { %v2008_v60 = vld [vmem:[%s1887_s26 + $0xd8] sm:$0xff]  ;;  %v2011_v61 = vld [vmem:[%s1887_s26 + $0xd0] sm:$0xff]  ;;  %v2018_v3 = vld [vmem:[%s1887_s26 + $0x68] sm:$0xff] }
  0x7c   : > { %656 = vmatpush1.bf16.msra.mxu0 %v1406_v27  ;;  %1304 = vmatpush1.bf16.msra.mxu1 %v1406_v27  ;;  %v302_v62 = vmul.f32 %v2008_v60, %v2008_v60  ;;  %v301_v63 = vmul.f32 %v2011_v61, %v2011_v61  ;;  %v2021_v4 = vld [vmem:[%s1887_s26 + $0x60] sm:$0xff]  ;;  %v288_v7 = vmul.f32 %v2018_v3, %v2018_v3  ;;  %v2030_v11 = vld [vmem:[%s1887_s26 + $0xe8] sm:$0xff]  ;;  %v2040_v19 = vld [vmem:[%s1887_s26 + $0x78] sm:$0xff] }
  0x7d   : > { %345 = vadd.xlane.f32.xlu1 %v294_v16  ;;  %657 = vmatprep.subr.bf16.mxu0 %v1407_v32  ;;  %v287_v10 = vmul.f32 %v2021_v4, %v2021_v4  ;;  %v2033_v16 = vld [vmem:[%s1887_s26 + $0xe0] sm:$0xff]  ;;  %v2043_v20 = vld [vmem:[%s1887_s26 + $0x70] sm:$0xff]  ;;  %v290_v21 = vmul.f32 %v2040_v19, %v2040_v19 }
  0x7e   : > { %343 = vadd.xlane.f32.xlu0 %v293_v17  ;;  %1297 = vmatprep.subr.bf16.mxu1 %v1407_v32  ;;  %v304_v17 = vmul.f32 %v2030_v11, %v2030_v11  ;;  %v303_v18 = vmul.f32 %v2033_v16, %v2033_v16  ;;  %v2053_v26 = vld [vmem:[%s1887_s26 + $0xf0] sm:$0xff] }
  0x80   : > { %658 = vmatpush1.bf16.msra.mxu0 %v1409_v33  ;;  %1305 = vmatpush1.bf16.msra.mxu1 %v1409_v33 }
  0x81   : > { %317 = vadd.xlane.f32.xlu1 %v280_v24  ;;  %659 = vmatprep.subr.bf16.mxu0 %v1410_v38  ;;  %v289_v24 = vmul.f32 %v2043_v20, %v2043_v20 }
  0x82   : > { %315 = vadd.xlane.f32.xlu0 %v279_v25  ;;  %1298 = vmatprep.subr.bf16.mxu1 %v1410_v38  ;;  %v2050_v25 = vld [vmem:[%s1887_s26 + $0xf8] sm:$0xff] }
  0x83   : > { %v306_v27 = vmul.f32 %v2050_v25, %v2050_v25 }
  0x84   : > { %660 = vmatpush1.bf16.msra.mxu0 %v1412_v39  ;;  %1306 = vmatpush1.bf16.msra.mxu1 %v1412_v39 }
  0x85   : > { %349 = vadd.xlane.f32.xlu1 %v296_v28  ;;  %661 = vmatprep.subr.bf16.mxu0 %v1413_v44  ;;  %v305_v28 = vmul.f32 %v2053_v26, %v2053_v26 }
  0x86   : > { %347 = vadd.xlane.f32.xlu0 %v295_v29  ;;  %1299 = vmatprep.subr.bf16.mxu1 %v1413_v44 }
  0x88   : > { %662 = vmatpush1.bf16.msra.mxu0 %v1415_v45  ;;  %1307 = vmatpush1.bf16.msra.mxu1 %v1415_v45 }
  0x89   : > { %321 = vadd.xlane.f32.xlu1 %v282_v34  ;;  %663 = vmatprep.subr.bf16.mxu0 %v1416_v50 }
  0x8a   : > { %319 = vadd.xlane.f32.xlu0 %v281_v35  ;;  %1300 = vmatprep.subr.bf16.mxu1 %v1416_v50 }
  0x8c   : > { %664 = vmatpush1.bf16.msra.mxu0 %v1418_v51  ;;  %1308 = vmatpush1.bf16.msra.mxu1 %v1418_v51 }
  0x8d   : > { %353 = vadd.xlane.f32.xlu1 %v298_v40  ;;  %665 = vmatprep.subr.bf16.mxu0 %v1419_v56 }
  0x8e   : > { %351 = vadd.xlane.f32.xlu0 %v297_v41  ;;  %1301 = vmatprep.subr.bf16.mxu1 %v1419_v56 }
  0x90   : > { %666 = vmatpush1.bf16.msra.mxu0 %v1421_v57  ;;  %1309 = vmatpush1.bf16.msra.mxu1 %v1421_v57 }
  0x91   : > { %325 = vadd.xlane.f32.xlu1 %v284_v46 }
  0x92   : > { %323 = vadd.xlane.f32.xlu0 %v283_v47 }
  0x95   : > { %357 = vadd.xlane.f32.xlu1 %v300_v52 }
  0x96   : > { %355 = vadd.xlane.f32.xlu0 %v299_v53 }
  0x99   : > { %329 = vadd.xlane.f32.xlu1 %v286_v58 }
  0x9a   : > { %327 = vadd.xlane.f32.xlu0 %v285_v59 }
  0x9d   : > { %361 = vadd.xlane.f32.xlu1 %v302_v62 }
  0x9e   : > { %359 = vadd.xlane.f32.xlu0 %v301_v63 }
  0xa1   : > { %333 = vadd.xlane.f32.xlu1 %v288_v7 }
  0xa2   : > { %331 = vadd.xlane.f32.xlu0 %v287_v10 }
  0xa5   : > { %365 = vadd.xlane.f32.xlu1 %v304_v17 }
  0xa6   : > { %363 = vadd.xlane.f32.xlu0 %v303_v18 }
  0xa9   : > { %337 = vadd.xlane.f32.xlu1 %v290_v21 }
  0xaa   : > { %335 = vadd.xlane.f32.xlu0 %v289_v24 }
  0xad   : > { %369 = vadd.xlane.f32.xlu1 %v306_v27 }
  0xae   : > { %367 = vadd.xlane.f32.xlu0 %v305_v28 }
  0xfe   : > { %v340_v29 = vpop.xlane.xlu1 %339 }
  0xff   : > { %v308_v32 = vpop.xlane.xlu0 %307  ;;  %v388_v33 = vmul.f32 0.0078125, %v340_v29 }
 0x100   : > { %v372_v34 = vmul.f32 0.0078125, %v308_v32 }
 0x101   : > { %v420_v35 = vadd.f32 1e-06, %v388_v33 }
 0x102   : > { %v404_v38 = vadd.f32 1e-06, %v372_v34  ;;  %v342_v39 = vpop.xlane.xlu1 %341 }
 0x103   : > { %v310_v40 = vpop.xlane.xlu0 %309  ;;  %1422 = vrsqrt.f32 %v420_v35  ;;  %v389_v41 = vmul.f32 0.0078125, %v342_v39  ;;  %v2061_v35 = vld [vmem:[#allocation5] ss:$0 sm:$0xff] }
 0x104   : > { %v373_v44 = vmul.f32 0.0078125, %v310_v40  ;;  %1424 = vrsqrt.f32 %v404_v38 }
 0x105   : > { %v421_v45 = vadd.f32 1e-06, %v389_v41 }
 0x106   : > { %v405_v46 = vadd.f32 1e-06, %v373_v44  ;;  %v314_v47 = vpop.xlane.xlu1 %313 }
 0x107   : > { %v312_v50 = vpop.xlane.xlu0 %311  ;;  %1426 = vrsqrt.f32 %v421_v45  ;;  %v375_v51 = vmul.f32 0.0078125, %v314_v47 }
 0x108   : > { %v374_v52 = vmul.f32 0.0078125, %v312_v50  ;;  %1428 = vrsqrt.f32 %v405_v46 }
 0x109   : > { %v407_v53 = vadd.f32 1e-06, %v375_v51 }
 0x10a   : > { %v406_v56 = vadd.f32 1e-06, %v374_v52  ;;  %v346_v57 = vpop.xlane.xlu1 %345 }
 0x10b   : > { %v344_v58 = vpop.xlane.xlu0 %343  ;;  %1430 = vrsqrt.f32 %v407_v53  ;;  %v391_v59 = vmul.f32 0.0078125, %v346_v57 }
 0x10c   : > { %v390_v62 = vmul.f32 0.0078125, %v344_v58  ;;  %1432 = vrsqrt.f32 %v406_v56 }
 0x10d   : > { %v1423_v63 = vpop.eup %1422  ;;  %v423_v7 = vadd.f32 1e-06, %v391_v59 }
 0x10e   : > { %v422_v10 = vadd.f32 1e-06, %v390_v62  ;;  %v1425_v17 = vpop.eup %1424  ;;  %v318_v18 = vpop.xlane.xlu1 %317  ;;  %v484_v28 = vmul.f32 %v1423_v63, %v1898_v0 }
 0x10f   : > { %v316_v21 = vpop.xlane.xlu0 %315  ;;  %1434 = vrsqrt.f32 %v423_v7  ;;  %v377_v24 = vmul.f32 0.0078125, %v318_v18  ;;  %v468_v34 = vmul.f32 %v1425_v17, %v1901_v1 }
 0x110   : > { %v376_v27 = vmul.f32 0.0078125, %v316_v21  ;;  %1436 = vrsqrt.f32 %v422_v10  ;;  %v523_v0 = vmul.f32 %v2061_v35, %v484_v28 }
 0x111   : > { %v1427_v29 = vpop.eup %1426  ;;  %v409_v32 = vadd.f32 1e-06, %v377_v24  ;;  %v507_v52 = vmul.f32 %v2061_v35, %v468_v34 }
 0x112   : > { %v408_v33 = vadd.f32 1e-06, %v376_v27  ;;  %v1429_v38 = vpop.eup %1428  ;;  %v350_v39 = vpop.xlane.xlu1 %349  ;;  %v485_v41 = vmul.f32 %v1427_v29, %v1904_v2 }
 0x113   : > { %v348_v40 = vpop.xlane.xlu0 %347  ;;  %1438 = vrsqrt.f32 %v409_v32  ;;  %v393_v44 = vmul.f32 0.0078125, %v350_v39  ;;  %v469_v46 = vmul.f32 %v1429_v38, %v1911_v5 }
 0x114   : > { %v392_v45 = vmul.f32 0.0078125, %v348_v40  ;;  %1440 = vrsqrt.f32 %v408_v33  ;;  %v524_v47 = vmul.f32 %v2061_v35, %v485_v41 }
 0x115   : > { %v1431_v50 = vpop.eup %1430  ;;  %v425_v51 = vadd.f32 1e-06, %v393_v44  ;;  %v508_v53 = vmul.f32 %v2061_v35, %v469_v46 }
 0x116   : > { %v424_v1 = vadd.f32 1e-06, %v392_v45  ;;  %v1433_v56 = vpop.eup %1432  ;;  %v322_v57 = vpop.xlane.xlu1 %321  ;;  %v547_v58 = vpack.c.bf16 %v524_v47, %v523_v0  ;;  %v471_v59 = vmul.f32 %v1431_v50, %v1918_v8 }
 0x117   : > { %v320_v2 = vpop.xlane.xlu0 %319  ;;  %1442 = vrsqrt.f32 %v425_v51  ;;  %v379_v5 = vmul.f32 0.0078125, %v322_v57  ;;  %v539_v63 = vpack.c.bf16 %v508_v53, %v507_v52  ;;  %v470_v7 = vmul.f32 %v1433_v56, %v1921_v9 }
 0x118   : > { %v378_v62 = vmul.f32 0.0078125, %v320_v2  ;;  %1444 = vrsqrt.f32 %v424_v1  ;;  %764 = vmatmul.mubr.bf16.vlgmr.msra.gmra.mrb[0].mxu1 %v547_v58  ;;  %v510_v28 = vmul.f32 %v2061_v35, %v471_v59 }
 0x119   : > { %v1435_v10 = vpop.eup %1434  ;;  %v411_v17 = vadd.f32 1e-06, %v379_v5  ;;  %684 = vmatmul.mubr.bf16.vlgmr.msra.gmra.mrb[0].mxu0 %v539_v63  ;;  %773 = vmatprep.mubr.bf16.mxu1 %v1665_v6  ;;  %v509_v8 = vmul.f32 %v2061_v35, %v470_v7 }
 0x11a   : > { %v410_v18 = vadd.f32 1e-06, %v378_v62  ;;  %v1437_v21 = vpop.eup %1436  ;;  %v354_v24 = vpop.xlane.xlu1 %353  ;;  %693 = vmatprep.mubr.bf16.mxu0 %v1665_v6  ;;  %v487_v29 = vmul.f32 %v1435_v10, %v1928_v12 }
 0x11b   : > { %v352_v27 = vpop.xlane.xlu0 %351  ;;  %1446 = vrsqrt.f32 %v411_v17  ;;  %v395_v32 = vmul.f32 0.0078125, %v354_v24  ;;  %v486_v33 = vmul.f32 %v1437_v21, %v1931_v13  ;;  %v540_v0 = vpack.c.bf16 %v510_v28, %v509_v8 }
 0x11c   : > { %v394_v9 = vmul.f32 0.0078125, %v352_v27  ;;  %1448 = vrsqrt.f32 %v410_v18  ;;  %v526_v34 = vmul.f32 %v2061_v35, %v487_v29 }
 0x11d   : > { %v1439_v38 = vpop.eup %1438  ;;  %v427_v39 = vadd.f32 1e-06, %v395_v32  ;;  %v525_v41 = vmul.f32 %v2061_v35, %v486_v33 }
 0x11e   : > { %v426_v40 = vadd.f32 1e-06, %v394_v9  ;;  %v1441_v44 = vpop.eup %1440  ;;  %v326_v45 = vpop.xlane.xlu1 %325  ;;  %v473_v47 = vmul.f32 %v1439_v38, %v1934_v14 }
 0x11f   : > { %v324_v46 = vpop.xlane.xlu0 %323  ;;  %1450 = vrsqrt.f32 %v427_v39  ;;  %v381_v12 = vmul.f32 0.0078125, %v326_v45  ;;  %v548_v51 = vpack.c.bf16 %v526_v34, %v525_v41  ;;  %v472_v13 = vmul.f32 %v1441_v44, %v1937_v15 }
 0x120   : > { %v380_v50 = vmul.f32 0.0078125, %v324_v46  ;;  %1452 = vrsqrt.f32 %v426_v40  ;;  %v512_v58 = vmul.f32 %v2061_v35, %v473_v47 }
 0x121   : > { %v1443_v1 = vpop.eup %1442  ;;  %v413_v52 = vadd.f32 1e-06, %v381_v12  ;;  %694 = vmatmul.mubr.bf16.gmra.mrb[4].mxu0 %v540_v0  ;;  %774 = vmatmul.mubr.bf16.gmra.mrb[4].mxu1 %v548_v51  ;;  %v511_v14 = vmul.f32 %v2061_v35, %v472_v13 }
 0x122   : > { %v412_v53 = vadd.f32 1e-06, %v380_v50  ;;  %v1445_v56 = vpop.eup %1444  ;;  %v358_v57 = vpop.xlane.xlu1 %357  ;;  %703 = vmatprep.mubr.bf16.mxu0 %v1665_v6  ;;  %783 = vmatprep.mubr.bf16.mxu1 %v1665_v6  ;;  %v489_v59 = vmul.f32 %v1443_v1, %v1944_v22 }
 0x123   : > { %v356_v2 = vpop.xlane.xlu0 %355  ;;  %1454 = vrsqrt.f32 %v413_v52  ;;  %v397_v15 = vmul.f32 0.0078125, %v358_v57  ;;  %v488_v62 = vmul.f32 %v1445_v56, %v1947_v23  ;;  %v541_v8 = vpack.c.bf16 %v512_v58, %v511_v14 }
 0x124   : > { %v396_v5 = vmul.f32 0.0078125, %v356_v2  ;;  %1456 = vrsqrt.f32 %v412_v53  ;;  %v528_v63 = vmul.f32 %v2061_v35, %v489_v59 }
 0x125   : > { %v1447_v7 = vpop.eup %1446  ;;  %v429_v10 = vadd.f32 1e-06, %v397_v15  ;;  %v527_v18 = vmul.f32 %v2061_v35, %v488_v62 }
 0x126   : > { %v428_v17 = vadd.f32 1e-06, %v396_v5  ;;  %v1449_v21 = vpop.eup %1448  ;;  %v330_v24 = vpop.xlane.xlu1 %329  ;;  %v475_v28 = vmul.f32 %v1447_v7, %v1958_v30 }
 0x127   : > { %v328_v27 = vpop.xlane.xlu0 %327  ;;  %1458 = vrsqrt.f32 %v429_v10  ;;  %v383_v22 = vmul.f32 0.0078125, %v330_v24  ;;  %v549_v32 = vpack.c.bf16 %v528_v63, %v527_v18  ;;  %v474_v23 = vmul.f32 %v1449_v21, %v1961_v31 }
 0x128   : > { %v382_v29 = vmul.f32 0.0078125, %v328_v27  ;;  %1460 = vrsqrt.f32 %v428_v17  ;;  %v514_v41 = vmul.f32 %v2061_v35, %v475_v28 }
 0x129   : > { %v1451_v9 = vpop.eup %1450  ;;  %v415_v33 = vadd.f32 1e-06, %v383_v22  ;;  %704 = vmatmul.mubr.bf16.gmra.mrb[8].mxu0 %v541_v8  ;;  %784 = vmatmul.mubr.bf16.gmra.mrb[8].mxu1 %v549_v32  ;;  %v513_v30 = vmul.f32 %v2061_v35, %v474_v23 }
 0x12a   : > { %v414_v34 = vadd.f32 1e-06, %v382_v29  ;;  %v1453_v38 = vpop.eup %1452  ;;  %v362_v39 = vpop.xlane.xlu1 %361  ;;  %713 = vmatprep.mubr.bf16.mxu0 %v1665_v6  ;;  %793 = vmatprep.mubr.bf16.mxu1 %v1665_v6  ;;  %v491_v44 = vmul.f32 %v1451_v9, %v1968_v36 }
 0x12b   : > { %v360_v40 = vpop.xlane.xlu0 %359  ;;  %1462 = vrsqrt.f32 %v415_v33  ;;  %v399_v31 = vmul.f32 0.0078125, %v362_v39  ;;  %v490_v46 = vmul.f32 %v1453_v38, %v1971_v37  ;;  %v542_v53 = vpack.c.bf16 %v514_v41, %v513_v30 }
 0x12c   : > { %v398_v45 = vmul.f32 0.0078125, %v360_v40  ;;  %1464 = vrsqrt.f32 %v414_v34  ;;  %v530_v0 = vmul.f32 %v2061_v35, %v491_v44 }
 0x12d   : > { %v1455_v47 = vpop.eup %1454  ;;  %v431_v12 = vadd.f32 1e-06, %v399_v31  ;;  %v529_v51 = vmul.f32 %v2061_v35, %v490_v46 }
 0x12e   : > { %v430_v50 = vadd.f32 1e-06, %v398_v45  ;;  %v1457_v13 = vpop.eup %1456  ;;  %v334_v1 = vpop.xlane.xlu1 %333  ;;  %v477_v56 = vmul.f32 %v1455_v47, %v1978_v42 }
 0x12f   : > { %v332_v52 = vpop.xlane.xlu0 %331  ;;  %1466 = vrsqrt.f32 %v431_v12  ;;  %v385_v36 = vmul.f32 0.0078125, %v334_v1  ;;  %v550_v2 = vpack.c.bf16 %v530_v0, %v529_v51  ;;  %v476_v37 = vmul.f32 %v1457_v13, %v1981_v43 }
 0x130   : > { %v384_v57 = vmul.f32 0.0078125, %v332_v52  ;;  %1468 = vrsqrt.f32 %v430_v50  ;;  %v516_v63 = vmul.f32 %v2061_v35, %v477_v56 }
 0x131   : > { %v1459_v14 = vpop.eup %1458  ;;  %v417_v58 = vadd.f32 1e-06, %v385_v36  ;;  %714 = vmatmul.mubr.bf16.gmra.mrb[12].mxu0 %v542_v53  ;;  %794 = vmatmul.mubr.bf16.gmra.mrb[12].mxu1 %v550_v2  ;;  %v515_v42 = vmul.f32 %v2061_v35, %v476_v37 }
 0x132   : > { %v416_v59 = vadd.f32 1e-06, %v384_v57  ;;  %v1461_v15 = vpop.eup %1460  ;;  %v366_v5 = vpop.xlane.xlu1 %365  ;;  %723 = vmatprep.mubr.bf16.mxu0 %v1665_v6  ;;  %803 = vmatprep.mubr.bf16.mxu1 %v1665_v6  ;;  %v493_v7 = vmul.f32 %v1459_v14, %v1988_v48 }
 0x133   : > { %v364_v62 = vpop.xlane.xlu0 %363  ;;  %1470 = vrsqrt.f32 %v417_v58  ;;  %v401_v43 = vmul.f32 0.0078125, %v366_v5  ;;  %v492_v17 = vmul.f32 %v1461_v15, %v1991_v49  ;;  %v543_v32 = vpack.c.bf16 %v516_v63, %v515_v42 }
 0x134   : > { %v400_v10 = vmul.f32 0.0078125, %v364_v62  ;;  %1472 = vrsqrt.f32 %v416_v59  ;;  %v532_v18 = vmul.f32 %v2061_v35, %v493_v7 }
 0x135   : > { %v1463_v21 = vpop.eup %1462  ;;  %v433_v24 = vadd.f32 1e-06, %v401_v43  ;;  %v531_v8 = vmul.f32 %v2061_v35, %v492_v17 }
 0x136   : > { %v432_v27 = vadd.f32 1e-06, %v400_v10  ;;  %v1465_v28 = vpop.eup %1464  ;;  %v338_v22 = vpop.xlane.xlu1 %337  ;;  %v479_v23 = vmul.f32 %v1463_v21, %v1998_v54 }
 0x137   : > { %v336_v29 = vpop.xlane.xlu0 %335  ;;  %1474 = vrsqrt.f32 %v433_v24  ;;  %v387_v48 = vmul.f32 0.0078125, %v338_v22  ;;  %v551_v33 = vpack.c.bf16 %v532_v18, %v531_v8  ;;  %v478_v49 = vmul.f32 %v1465_v28, %v2001_v55 }
 0x138   : > { %v386_v9 = vmul.f32 0.0078125, %v336_v29  ;;  %1476 = vrsqrt.f32 %v432_v27  ;;  %v518_v44 = vmul.f32 %v2061_v35, %v479_v23 }
 0x139   : > { %v1467_v34 = vpop.eup %1466  ;;  %v419_v38 = vadd.f32 1e-06, %v387_v48  ;;  %724 = vmatmul.mubr.bf16.gmra.mrb[16].mxu0 %v543_v32  ;;  %804 = vmatmul.mubr.bf16.gmra.mrb[16].mxu1 %v551_v33  ;;  %v517_v54 = vmul.f32 %v2061_v35, %v478_v49 }
 0x13a   : > { %v418_v39 = vadd.f32 1e-06, %v386_v9  ;;  %v1469_v40 = vpop.eup %1468  ;;  %v370_v30 = vpop.xlane.xlu1 %369  ;;  %733 = vmatprep.mubr.bf16.mxu0 %v1665_v6  ;;  %813 = vmatprep.mubr.bf16.mxu1 %v1665_v6  ;;  %v495_v31 = vmul.f32 %v1467_v34, %v2008_v60 }
 0x13b   : > { %v368_v41 = vpop.xlane.xlu0 %367  ;;  %1478 = vrsqrt.f32 %v419_v38  ;;  %v403_v55 = vmul.f32 0.0078125, %v370_v30  ;;  %v494_v46 = vmul.f32 %v1469_v40, %v2011_v61  ;;  %v544_v1 = vpack.c.bf16 %v518_v44, %v517_v54 }
 0x13c   : > { %v402_v45 = vmul.f32 0.0078125, %v368_v41  ;;  %1480 = vrsqrt.f32 %v418_v39  ;;  %v534_v0 = vmul.f32 %v2061_v35, %v495_v31 }
 0x13d   : > { %v1471_v47 = vpop.eup %1470  ;;  %v435_v12 = vadd.f32 1e-06, %v403_v55  ;;  %v533_v51 = vmul.f32 %v2061_v35, %v494_v46 }
 0x13e   : > { %v434_v50 = vadd.f32 1e-06, %v402_v45  ;;  %v1473_v13 = vpop.eup %1472  ;;  %v481_v60 = vmul.f32 %v1471_v47, %v2018_v3 }
 0x13f   : > { %1482 = vrsqrt.f32 %v435_v12  ;;  %v552_v52 = vpack.c.bf16 %v534_v0, %v533_v51  ;;  %v480_v53 = vmul.f32 %v1473_v13, %v2021_v4 }
 0x140   : > { %1484 = vrsqrt.f32 %v434_v50  ;;  %v520_v2 = vmul.f32 %v2061_v35, %v481_v60 }
 0x141   : > { %v1475_v56 = vpop.eup %1474  ;;  %734 = vmatmul.mubr.bf16.gmra.mrb[20].mxu0 %v544_v1  ;;  %814 = vmatmul.mubr.bf16.gmra.mrb[20].mxu1 %v552_v52  ;;  %v519_v57 = vmul.f32 %v2061_v35, %v480_v53 }
 0x142   : > { %v1477_v61 = vpop.eup %1476  ;;  %743 = vmatprep.mubr.bf16.mxu0 %v1665_v6  ;;  %823 = vmatprep.mubr.bf16.mxu1 %v1665_v6  ;;  %v497_v36 = vmul.f32 %v1475_v56, %v2030_v11 }
 0x143   : > { %v496_v37 = vmul.f32 %v1477_v61, %v2033_v16  ;;  %v545_v59 = vpack.c.bf16 %v520_v2, %v519_v57 }
 0x144   : > { %v536_v4 = vmul.f32 %v2061_v35, %v497_v36 }
 0x145   : > { %v1479_v3 = vpop.eup %1478  ;;  %v535_v14 = vmul.f32 %v2061_v35, %v496_v37 }
 0x146   : > { %v1481_v58 = vpop.eup %1480  ;;  %v483_v62 = vmul.f32 %v1479_v3, %v2040_v19 }
 0x147   : > { %v553_v15 = vpack.c.bf16 %v536_v4, %v535_v14  ;;  %v482_v5 = vmul.f32 %v1481_v58, %v2043_v20 }
 0x148   : > { %v522_v7 = vmul.f32 %v2061_v35, %v483_v62 }
 0x149   : > { %v1483_v42 = vpop.eup %1482  ;;  %744 = vmatmul.mubr.bf16.gmra.mrb[24].mxu0 %v545_v59  ;;  %824 = vmatmul.mubr.bf16.gmra.mrb[24].mxu1 %v553_v15  ;;  %v521_v63 = vmul.f32 %v2061_v35, %v482_v5 }
 0x14a   : > { %v1485_v11 = vpop.eup %1484  ;;  %753 = vmatprep.mubr.bf16.mxu0 %v1665_v6  ;;  %833 = vmatprep.mubr.bf16.mxu1 %v1665_v6  ;;  %v499_v16 = vmul.f32 %v1483_v42, %v2050_v25 }
 0x14b   : > { %v498_v43 = vmul.f32 %v1485_v11, %v2053_v26  ;;  %v546_v10 = vpack.c.bf16 %v522_v7, %v521_v63 }
 0x14c   : > { %v538_v20 = vmul.f32 %v2061_v35, %v499_v16 }
 0x14d   : > { %v537_v19 = vmul.f32 %v2061_v35, %v498_v43 }
 0x14f   : > { %v554_v17 = vpack.c.bf16 %v538_v20, %v537_v19 }
 0x151   : > { %754 = vmatmul.mubr.bf16.gmra.mrb[28].mxu0 %v546_v10  ;;  %834 = vmatmul.mubr.bf16.gmra.mrb[28].mxu1 %v554_v17 }
 0x1eb   : > { %v765_v18 = vpop.f32.mrb[0].mxu1 }
 0x1ec   : > { %v685_v21 = vpop.f32.mrb[0].mxu0  ;;  %v767_v6 = vpop.f32.mrb[1].mxu1 }
 0x1ed   : > { %v687_v24 = vpop.f32.mrb[1].mxu0  ;;  %v1276_v25 = vpack.c.bf16 %v767_v6, %v765_v18  ;;  %v769_v27 = vpop.f32.mrb[2].mxu1 }
 0x1ee   : > { %v1260_v8 = vpack.c.bf16 %v687_v24, %v685_v21  ;;  %v689_v28 = vpop.f32.mrb[2].mxu0  ;;  %v771_v22 = vpop.f32.mrb[3].mxu1 }
 0x1ef   : > { %1052 = vst [vmem:[%s2141_s20 + $0x80] sm:$0xff] %v1276_v25  ;;  %v691_v26 = vpop.f32.mrb[3].mxu0  ;;  %v1277_v35 = vpack.c.bf16 %v771_v22, %v769_v27 }
 0x1f0   : > { %1036 = vst [vmem:[%s2141_s20] sm:$0xff] %v1260_v8  ;;  %v1261_v29 = vpack.c.bf16 %v691_v26, %v689_v28 }
 0x1f1   : > { %1053 = vst [vmem:[%s2141_s20 + $0x88] sm:$0xff] %v1277_v35 }
 0x1f2   : > { %1037 = vst [vmem:[%s2141_s20 + $0x8] sm:$0xff] %v1261_v29 }
 0x1f4   : > { %v695_v32 = vpop.f32.mrb[4].mxu0  ;;  %v775_v23 = vpop.f32.mrb[4].mxu1 }
 0x1f5   : > { %v697_v48 = vpop.f32.mrb[5].mxu0  ;;  %v777_v9 = vpop.f32.mrb[5].mxu1 }
 0x1f6   : > { %v1262_v33 = vpack.c.bf16 %v697_v48, %v695_v32  ;;  %v1278_v49 = vpack.c.bf16 %v777_v9, %v775_v23  ;;  %v699_v34 = vpop.f32.mrb[6].mxu0  ;;  %v779_v38 = vpop.f32.mrb[6].mxu1 }
 0x1f7   : > { %v701_v39 = vpop.f32.mrb[7].mxu0  ;;  %v781_v40 = vpop.f32.mrb[7].mxu1 }
 0x1f8   : > { %1038 = vst [vmem:[%s2141_s20 + $0x10] sm:$0xff] %v1262_v33  ;;  %1054 = vst [vmem:[%s2141_s20 + $0x90] sm:$0xff] %v1278_v49  ;;  %v1263_v30 = vpack.c.bf16 %v701_v39, %v699_v34  ;;  %v1279_v41 = vpack.c.bf16 %v781_v40, %v779_v38 }
 0x1fa   : > { %1039 = vst [vmem:[%s2141_s20 + $0x18] sm:$0xff] %v1263_v30  ;;  %1055 = vst [vmem:[%s2141_s20 + $0x98] sm:$0xff] %v1279_v41 }
 0x1fc   : > { %v705_v54 = vpop.f32.mrb[8].mxu0  ;;  %v785_v44 = vpop.f32.mrb[8].mxu1 }
 0x1fd   : > { %v707_v31 = vpop.f32.mrb[9].mxu0  ;;  %v787_v55 = vpop.f32.mrb[9].mxu1 }
 0x1fe   : > { %v1264_v45 = vpack.c.bf16 %v707_v31, %v705_v54  ;;  %v1280_v46 = vpack.c.bf16 %v787_v55, %v785_v44  ;;  %v709_v0 = vpop.f32.mrb[10].mxu0  ;;  %v789_v47 = vpop.f32.mrb[10].mxu1 }
 0x1ff   : > { %v711_v12 = vpop.f32.mrb[11].mxu0  ;;  %v791_v50 = vpop.f32.mrb[11].mxu1 }
 0x200   : > { %1040 = vst [vmem:[%s2141_s20 + $0x20] sm:$0xff] %v1264_v45  ;;  %1056 = vst [vmem:[%s2141_s20 + $0xa0] sm:$0xff] %v1280_v46  ;;  %v1265_v51 = vpack.c.bf16 %v711_v12, %v709_v0  ;;  %v1281_v13 = vpack.c.bf16 %v791_v50, %v789_v47 }
 0x202   : > { %1041 = vst [vmem:[%s2141_s20 + $0x28] sm:$0xff] %v1265_v51  ;;  %1057 = vst [vmem:[%s2141_s20 + $0xa8] sm:$0xff] %v1281_v13 }
 0x204   : > { %v715_v1 = vpop.f32.mrb[12].mxu0  ;;  %v795_v52 = vpop.f32.mrb[12].mxu1 }
 0x205   : > { %v717_v53 = vpop.f32.mrb[13].mxu0  ;;  %v797_v60 = vpop.f32.mrb[13].mxu1 }
 0x206   : > { %v1266_v56 = vpack.c.bf16 %v717_v53, %v715_v1  ;;  %v1282_v61 = vpack.c.bf16 %v797_v60, %v795_v52  ;;  %v719_v36 = vpop.f32.mrb[14].mxu0  ;;  %v799_v57 = vpop.f32.mrb[14].mxu1 }
 0x207   : > { %v721_v2 = vpop.f32.mrb[15].mxu0  ;;  %v801_v37 = vpop.f32.mrb[15].mxu1 }
 0x208   : > { %1042 = vst [vmem:[%s2141_s20 + $0x30] sm:$0xff] %v1266_v56  ;;  %1058 = vst [vmem:[%s2141_s20 + $0xb0] sm:$0xff] %v1282_v61  ;;  %v1267_v4 = vpack.c.bf16 %v721_v2, %v719_v36  ;;  %v1283_v3 = vpack.c.bf16 %v801_v37, %v799_v57 }
 0x20a   : > { %1043 = vst [vmem:[%s2141_s20 + $0x38] sm:$0xff] %v1267_v4  ;;  %1059 = vst [vmem:[%s2141_s20 + $0xb8] sm:$0xff] %v1283_v3 }
 0x20c   : > { %v725_v14 = vpop.f32.mrb[16].mxu0  ;;  %v805_v58 = vpop.f32.mrb[16].mxu1 }
 0x20d   : > { %v727_v59 = vpop.f32.mrb[17].mxu0  ;;  %v807_v15 = vpop.f32.mrb[17].mxu1 }
 0x20e   : > { %v1268_v5 = vpack.c.bf16 %v727_v59, %v725_v14  ;;  %v1284_v62 = vpack.c.bf16 %v807_v15, %v805_v58  ;;  %v729_v42 = vpop.f32.mrb[18].mxu0  ;;  %v809_v11 = vpop.f32.mrb[18].mxu1 }
 0x20f   : > { %v731_v16 = vpop.f32.mrb[19].mxu0  ;;  %v811_v63 = vpop.f32.mrb[19].mxu1 }
 0x210   : > { %1044 = vst [vmem:[%s2141_s20 + $0x40] sm:$0xff] %v1268_v5  ;;  %1060 = vst [vmem:[%s2141_s20 + $0xc0] sm:$0xff] %v1284_v62  ;;  %v1269_v7 = vpack.c.bf16 %v731_v16, %v729_v42  ;;  %v1285_v43 = vpack.c.bf16 %v811_v63, %v809_v11 }
 0x212   : > { %1045 = vst [vmem:[%s2141_s20 + $0x48] sm:$0xff] %v1269_v7  ;;  %1061 = vst [vmem:[%s2141_s20 + $0xc8] sm:$0xff] %v1285_v43 }
 0x214   : > { %v735_v20 = vpop.f32.mrb[20].mxu0  ;;  %v815_v19 = vpop.f32.mrb[20].mxu1 }
 0x215   : > { %v737_v10 = vpop.f32.mrb[21].mxu0  ;;  %v817_v17 = vpop.f32.mrb[21].mxu1 }
 0x216   : > { %v1270_v18 = vpack.c.bf16 %v737_v10, %v735_v20  ;;  %v1286_v21 = vpack.c.bf16 %v817_v17, %v815_v19  ;;  %v739_v6 = vpop.f32.mrb[22].mxu0  ;;  %v819_v24 = vpop.f32.mrb[22].mxu1 }
 0x217   : > { %v741_v25 = vpop.f32.mrb[23].mxu0  ;;  %v821_v27 = vpop.f32.mrb[23].mxu1 }
 0x218   : > { %1046 = vst [vmem:[%s2141_s20 + $0x50] sm:$0xff] %v1270_v18  ;;  %1062 = vst [vmem:[%s2141_s20 + $0xd0] sm:$0xff] %v1286_v21  ;;  %v1271_v8 = vpack.c.bf16 %v741_v25, %v739_v6  ;;  %v1287_v28 = vpack.c.bf16 %v821_v27, %v819_v24 }
 0x21a   : > { %1047 = vst [vmem:[%s2141_s20 + $0x58] sm:$0xff] %v1271_v8  ;;  %1063 = vst [vmem:[%s2141_s20 + $0xd8] sm:$0xff] %v1287_v28 }
 0x21c   : > { %v745_v22 = vpop.f32.mrb[24].mxu0  ;;  %v825_v26 = vpop.f32.mrb[24].mxu1 }
 0x21d   : > { %v747_v35 = vpop.f32.mrb[25].mxu0  ;;  %v827_v29 = vpop.f32.mrb[25].mxu1 }
 0x21e   : > { %v1272_v32 = vpack.c.bf16 %v747_v35, %v745_v22  ;;  %v1288_v23 = vpack.c.bf16 %v827_v29, %v825_v26  ;;  %v749_v48 = vpop.f32.mrb[26].mxu0  ;;  %v829_v9 = vpop.f32.mrb[26].mxu1 }
 0x21f   : > { %v751_v33 = vpop.f32.mrb[27].mxu0  ;;  %v831_v49 = vpop.f32.mrb[27].mxu1 }
 0x220   : > { %1048 = vst [vmem:[%s2141_s20 + $0x60] sm:$0xff] %v1272_v32  ;;  %1064 = vst [vmem:[%s2141_s20 + $0xe0] sm:$0xff] %v1288_v23  ;;  %v1273_v34 = vpack.c.bf16 %v751_v33, %v749_v48  ;;  %v1289_v38 = vpack.c.bf16 %v831_v49, %v829_v9 }
 0x222   : > { %1049 = vst [vmem:[%s2141_s20 + $0x68] sm:$0xff] %v1273_v34  ;;  %1065 = vst [vmem:[%s2141_s20 + $0xe8] sm:$0xff] %v1289_v38 }
 0x224   : > { %v755_v39 = vpop.f32.mrb[28].mxu0  ;;  %v835_v40 = vpop.f32.mrb[28].mxu1 }
 0x225   : > { %v757_v30 = vpop.f32.mrb[29].mxu0  ;;  %v837_v41 = vpop.f32.mrb[29].mxu1 }
 0x226   : > { %v1274_v54 = vpack.c.bf16 %v757_v30, %v755_v39  ;;  %v1290_v44 = vpack.c.bf16 %v837_v41, %v835_v40  ;;  %v759_v31 = vpop.f32.mrb[30].mxu0  ;;  %v839_v55 = vpop.f32.mrb[30].mxu1 }
 0x227   : > { %v761_v45 = vpop.f32.mrb[31].mxu0  ;;  %v841_v46 = vpop.f32.mrb[31].mxu1 }
 0x228   : > { %1050 = vst [vmem:[%s2141_s20 + $0x70] sm:$0xff] %v1274_v54  ;;  %1066 = vst [vmem:[%s2141_s20 + $0xf0] sm:$0xff] %v1290_v44  ;;  %v1275_v0 = vpack.c.bf16 %v761_v45, %v759_v31  ;;  %v1291_v47 = vpack.c.bf16 %v841_v46, %v839_v55 }
 0x22a   : > { %1051 = vst [vmem:[%s2141_s20 + $0x78] sm:$0xff] %v1275_v0  ;;  %1067 = vst [vmem:[%s2141_s20 + $0xf8] sm:$0xff] %v1291_v47 }
 0x22b   : > { %1585 = shalt.err (!%p1582_p8)
}
 0x22c   : > { %s1586_s6 = scalar_lea.hbm %s2176_s8, 4096  ;;  %s1590_s9 = scalar_lea.hbm %s2233_s3, 16384 }
 0x22d   : > { %p1587_p1 = scmp.ne.s32.totalorder %s2176_s8, %s1586_s6  ;;  %p1591_p7 = scmp.lt.u32.totalorder %s2176_s8, %s2233_s3 }
 0x22e   : > { %p1592_p3 = scmp.lt.u32.totalorder %s1590_s9, %s1586_s6  ;;  %p1594_p12 = scmp.lt.u32.totalorder %s1586_s6, %s2176_s8 }
 0x22f   : > { %p1588_p4 = pnand %p1587_p1, %p2254_p10 }
 0x230   : > { %p1593_p2 = por %p1592_p3, %p1591_p7 }
 0x231   : > { %p1589_p6 = pneg %p1588_p4 }
 0x232   : > { %p1595_p11 = por %p1594_p12, %p1593_p2 }
 0x234   : > { %p1596_p13 = pnand %p1595_p11, %p1589_p6 }
 0x236   : > { %1599 = shalt.err (!%p1596_p13)
}
 0x237   : > { %s1667_s20 = smov 128   ;;  %s1668_s22 = smov 8  }
 0x238   : > { %1320 = dma.vmem_to_hbm [thread:$0]  (%p2254_p10), %s2178_s25, 4096, %s2176_s8, %s1069_s15, %s1667_s20, %s1667_s20, %s1668_s22  }
 0x239 PF: > { %p1342_p0 = scmp.ge.s32.totalorder %s1658_s17, 2  ;;  %s1100_s11 = sand.u32 1, %s1638_s12  }
 0x23a   : > { %p2255_p5 = scmp.ne.s32.totalorder %s2244_s24, 0  ;;  %s1101_s18 = scalar_lea.sflag [#allocation4], %s1100_s11 }
 0x23c   : > { %p1334_p9 = pnand %p1342_p0, %p2255_p5 }
 0x23e   : > { %1633 = dma.done.wait (!%p1334_p9), %s1101_s18, 4096  }
 0x23f   : > { %1635 = vsyncadd (!%p1334_p9), %s1101_s18, 4294963200  ;;  %s20_s17 = sadd.s32 1, %s1658_s17   ;;  %s2256_s12 = smov %s1642_s13 }
 0x240   : > { %p17_p8 = scmp.ge.s32.totalorder %s20_s17, 6   ;;  %s2257_s13 = smov %s1646_s14 }
 0x241   : > { %s2258_s14 = smov %s1876_s7  ;;  %s2259_s15 = smov %s1654_s16 }
 0x242   : > { %s2260_s16 = smov %s2262_s29  ;;  %19 = sbr.rel (!%p17_p8) target bundleno = 7 (0x7), region = 86 }
 0x249   :  { %1106 = vsyncpa [#allocation3], 1 }
 0x24a   :  { %1108 = vsyncpa [#allocation3 + $0x1], 1 }
 0x24b   :  { %1109 = vsyncpa [#allocation6], 1 }
 0x24c   :  { %1110 = vsyncpa [#allocation4], 1 }
 0x24d   :  { %1112 = vsyncpa [#allocation4 + $0x1], 1 }

</bundles_post_ra>
